<compile_context>
chip_gen: v5e
topology: v5e:2x2
jax: 0.10.0
libtpu: 0.0.40
codegen_flags: <defaults>
</compile_context>

<pallas_src>
import jax
import jax.numpy as jnp
from jax.experimental import pallas as pl
from jax.experimental.pallas import tpu as pltpu

OBS_DIM = 4      # CartPole observation size
HIDDEN = 128     # fc1 output
N_ACT = 2        # fc2 output (actions)
PAD_ACT = 128    # lane-dense padded action axis
TM = 128         # batch rows per grid step (MXU row tile)
NEG_INF = jnp.float32(-1e30)   # finite "-inf" for padded logits (avoids NaN)


def policy_kernel(x_ref, w1_ref, b1_ref, w2_ref, b2_ref, out_ref):
    """x:(TM,4) w1:(4,128) b1:(1,128) w2:(128,128) b2:(1,128) out:(TM,128)."""
    x = x_ref[...]
    h = jnp.dot(x, w1_ref[...], preferred_element_type=jnp.float32) + b1_ref[...]
    h = jnp.maximum(h, 0.0)                                         # ReLU
    logits = jnp.dot(h, w2_ref[...], preferred_element_type=jnp.float32) + b2_ref[...]
    # Padded lanes carry bias -1e30 -> exp underflows to exactly 0, so they get
    # zero probability mass and the softmax over the first N_ACT lanes matches
    # torch.softmax(fc2(x), dim=0) on the unbatched 1-D input.
    m = jnp.max(logits, axis=-1, keepdims=True)
    e = jnp.exp(logits - m)
    s = jnp.sum(e, axis=-1, keepdims=True)
    # pl.reciprocal(s, approx=True) would move the divide onto the EUP slot;
    # kept exact here to preserve strict numerical parity with the reference.
    out_ref[...] = e / s


def init_params(key):
    """nn.Linear-style init (uniform +-1/sqrt(fan_in)) in PyTorch layout."""
    k1, k2, k3, k4 = jax.random.split(key, 4)
    bound1 = 1.0 / jnp.sqrt(OBS_DIM)
    bound2 = 1.0 / jnp.sqrt(HIDDEN)
    w1 = jax.random.uniform(k1, (HIDDEN, OBS_DIM), jnp.float32, -bound1, bound1)
    b1 = jax.random.uniform(k2, (HIDDEN,), jnp.float32, -bound1, bound1)
    w2 = jax.random.uniform(k3, (N_ACT, HIDDEN), jnp.float32, -bound2, bound2)
    b2 = jax.random.uniform(k4, (N_ACT,), jnp.float32, -bound2, bound2)
    return w1, b1, w2, b2


def prepare_params(w1, b1, w2, b2):
    """One-time re-layout: transposed (in,out) weights + lane-padded action axis.

    Done once outside the per-step hot path so no transpose/reshape/pad HLO is
    re-emitted on every forward call; keep these arrays resident on device.
    """
    w1t = jnp.asarray(w1, jnp.float32).T                              # (4, 128)
    b1r = jnp.asarray(b1, jnp.float32).reshape(1, HIDDEN)             # (1, 128)
    w2p = (jnp.zeros((HIDDEN, PAD_ACT), jnp.float32)
           .at[:, :N_ACT].set(jnp.asarray(w2, jnp.float32).T))        # (128, 128)
    b2p = (jnp.full((1, PAD_ACT), NEG_INF, jnp.float32)
           .at[0, :N_ACT].set(jnp.asarray(b2, jnp.float32)))          # (1, 128)
    return w1t, b1r, w2p, b2p


@jax.jit
def policy_forward(x, w1t, b1r, w2p, b2p):
    """x: (B, 4) float32 observations -> (B, 2) action probabilities."""
    B = x.shape[0]
    pad = (-B) % TM
    if pad:                                    # static under jit
        x = jnp.pad(x, ((0, pad), (0, 0)))
    Bp = B + pad
    out = pl.pallas_call(
        policy_kernel,
        out_shape=jax.ShapeDtypeStruct((Bp, PAD_ACT), jnp.float32),
        grid=(Bp // TM,),
        in_specs=[
            pl.BlockSpec((TM, OBS_DIM), lambda i: (i, 0)),       # x tile
            pl.BlockSpec((OBS_DIM, HIDDEN), lambda i: (0, 0)),   # w1^T (resident)
            pl.BlockSpec((1, HIDDEN), lambda i: (0, 0)),         # b1
            pl.BlockSpec((HIDDEN, PAD_ACT), lambda i: (0, 0)),   # w2^T (lane-padded)
            pl.BlockSpec((1, PAD_ACT), lambda i: (0, 0)),        # b2  (lane-padded)
        ],
        out_specs=pl.BlockSpec((TM, PAD_ACT), lambda i: (i, 0)),
        compiler_params=pltpu.CompilerParams(
            dimension_semantics=("parallel",)),   # shard batch tiles across TCs (v7x)
    )(x, w1t, b1r, w2p, b2p)
    return out[:B, :N_ACT]


def policy_forward_single(x, w1t, b1r, w2p, b2p):
    """Original REINFORCE call signature: x (4,) -> (2,) action probabilities."""
    return policy_forward(x.reshape(1, OBS_DIM), w1t, b1r, w2p, b2p)[0]


def reference_forward(x, w1, b1, w2, b2):
    """Pure-JAX reference in PyTorch layout (softmax over the action axis)."""
    h = jnp.maximum(x @ w1.T + b1, 0.0)
    logits = h @ w2.T + b2
    return jax.nn.softmax(logits, axis=-1)   # == torch softmax dim=0 for 1-D x


if __name__ == "__main__":
    key = jax.random.PRNGKey(0)
    kp, kx = jax.random.split(key)
    w1, b1, w2, b2 = init_params(kp)
    params = prepare_params(w1, b1, w2, b2)      # resident kernel-layout weights

    B = 256                                      # 2 tiles of 128 -> grid=(2,)
    xb = jax.random.normal(kx, (B, OBS_DIM), jnp.float32)

    probs = policy_forward(xb, *params)
    probs = jax.block_until_ready(probs)

    ref = reference_forward(xb, w1, b1, w2, b2)
    assert probs.shape == (B, N_ACT)
    assert jnp.allclose(probs, ref, atol=2e-5, rtol=1e-4)
    assert jnp.allclose(jnp.sum(probs, axis=-1), 1.0, atol=1e-5)

    # Single-observation path (what Policy.forward sees in the REINFORCE loop).
    x1 = xb[0]
    p1 = jax.block_until_ready(policy_forward_single(x1, *params))
    ref1 = reference_forward(x1.reshape(1, OBS_DIM), w1, b1, w2, b2)[0]
    assert p1.shape == (N_ACT,)
    assert jnp.allclose(p1, ref1, atol=2e-5, rtol=1e-4)

    print("KERNEL_OK")
</pallas_src>

<mosaic_0001>
module attributes {stable_mosaic.version = 11 : i64} {
  func.func @policy_kernel(%arg0: i32, %arg1: memref<128x4xf32, #tpu.memory_space<vmem>>, %arg2: memref<4x128xf32, #tpu.memory_space<vmem>>, %arg3: memref<1x128xf32, #tpu.memory_space<vmem>>, %arg4: memref<128x128xf32, #tpu.memory_space<vmem>>, %arg5: memref<1x128xf32, #tpu.memory_space<vmem>>, %arg6: memref<128x128xf32, #tpu.memory_space<vmem>>) attributes {dimension_semantics = [#tpu.dimension_semantics<parallel>], iteration_bounds = array<i64: 2>, scalar_prefetch = 0 : i64, scratch_operands = 0 : i64, tpu.core_type = #tpu.core_type<tc>, window_params = [{transform_indices = @transform_0, window_bounds = array<i64: 128, 4>}, {pipeline_mode = #tpu.pipeline_mode<synchronous>, transform_indices = @transform_1, window_bounds = array<i64: 4, 128>}, {pipeline_mode = #tpu.pipeline_mode<synchronous>, transform_indices = @transform_2, window_bounds = array<i64: 1, 128>}, {pipeline_mode = #tpu.pipeline_mode<synchronous>, transform_indices = @transform_3, window_bounds = array<i64: 128, 128>}, {pipeline_mode = #tpu.pipeline_mode<synchronous>, transform_indices = @transform_4, window_bounds = array<i64: 1, 128>}, {transform_indices = @transform_5, window_bounds = array<i64: 128, 128>}]} {
    %c0 = arith.constant 0 : index
    %c0_0 = arith.constant 0 : index
    %0 = vector.load %arg1[%c0, %c0_0] : memref<128x4xf32, #tpu.memory_space<vmem>>, vector<128x4xf32>
    %c0_1 = arith.constant 0 : index
    %c0_2 = arith.constant 0 : index
    %1 = vector.load %arg2[%c0_1, %c0_2] : memref<4x128xf32, #tpu.memory_space<vmem>>, vector<4x128xf32>
    %cst = arith.constant dense<0.000000e+00> : vector<128x128xf32>
    %2 = tpu.matmul %0, %1, %cst {dimension_numbers = #tpu.dot_dimension_numbers<[1], [0], [0], [1], [0, 0, 1, 1], [], []>} : vector<128x4xf32>, vector<4x128xf32>, vector<128x128xf32> -> vector<128x128xf32>
    %c0_3 = arith.constant 0 : index
    %c0_4 = arith.constant 0 : index
    %3 = vector.load %arg3[%c0_3, %c0_4] : memref<1x128xf32, #tpu.memory_space<vmem>>, vector<1x128xf32>
    %4 = vector.broadcast %3 : vector<1x128xf32> to vector<128x128xf32>
    %5 = arith.addf %2, %4 : vector<128x128xf32>
    %cst_5 = arith.constant 0.000000e+00 : f32
    %6 = vector.broadcast %cst_5 : f32 to vector<128x128xf32>
    %7 = arith.maximumf %5, %6 : vector<128x128xf32>
    %c0_6 = arith.constant 0 : index
    %c0_7 = arith.constant 0 : index
    %8 = vector.load %arg4[%c0_6, %c0_7] : memref<128x128xf32, #tpu.memory_space<vmem>>, vector<128x128xf32>
    %cst_8 = arith.constant dense<0.000000e+00> : vector<128x128xf32>
    %9 = tpu.matmul %7, %8, %cst_8 {dimension_numbers = #tpu.dot_dimension_numbers<[1], [0], [0], [1], [0, 0, 1, 1], [], []>} : vector<128x128xf32>, vector<128x128xf32>, vector<128x128xf32> -> vector<128x128xf32>
    %c0_9 = arith.constant 0 : index
    %c0_10 = arith.constant 0 : index
    %10 = vector.load %arg5[%c0_9, %c0_10] : memref<1x128xf32, #tpu.memory_space<vmem>>, vector<1x128xf32>
    %11 = vector.broadcast %10 : vector<1x128xf32> to vector<128x128xf32>
    %12 = arith.addf %9, %11 : vector<128x128xf32>
    %cst_11 = arith.constant dense<0xFF800000> : vector<128xf32>
    %13 = vector.multi_reduction <maximumf>, %12, %cst_11 [1] : vector<128x128xf32> to vector<128xf32>
    %14 = vector.shape_cast %13 : vector<128xf32> to vector<128x1xf32>
    %15 = vector.broadcast %14 : vector<128x1xf32> to vector<128x128xf32>
    %16 = arith.subf %12, %15 : vector<128x128xf32>
    %17 = math.exp %16 : vector<128x128xf32>
    %cst_12 = arith.constant dense<0.000000e+00> : vector<128xf32>
    %18 = vector.multi_reduction <add>, %17, %cst_12 [1] : vector<128x128xf32> to vector<128xf32>
    %19 = vector.shape_cast %18 : vector<128xf32> to vector<128x1xf32>
    %20 = vector.broadcast %19 : vector<128x1xf32> to vector<128x128xf32>
    %21 = arith.divf %17, %20 : vector<128x128xf32>
    %c0_13 = arith.constant 0 : index
    %c0_14 = arith.constant 0 : index
    %22 = vector.load %arg6[%c0_13, %c0_14] : memref<128x128xf32, #tpu.memory_space<vmem>>, vector<128x128xf32>
    tpu.vector_store %arg6[%c0_13, %c0_14], %21 {strides = array<i32>} : memref<128x128xf32, #tpu.memory_space<vmem>>, vector<128x128xf32>,
    return
  }
  func.func @transform_0(%arg0: i32) -> (i32, i32) {
    %c0_i32 = arith.constant 0 : i32
    %c0_i32_0 = arith.constant 0 : i32
    return %arg0, %c0_i32 : i32, i32
  }
  func.func @transform_1(%arg0: i32) -> (i32, i32) {
    %c0_i32 = arith.constant 0 : i32
    %c0_i32_0 = arith.constant 0 : i32
    %c0_i32_1 = arith.constant 0 : i32
    return %c0_i32, %c0_i32_0 : i32, i32
  }
  func.func @transform_2(%arg0: i32) -> (i32, i32) {
    %c0_i32 = arith.constant 0 : i32
    %c0_i32_0 = arith.constant 0 : i32
    %c0_i32_1 = arith.constant 0 : i32
    return %c0_i32, %c0_i32_0 : i32, i32
  }
  func.func @transform_3(%arg0: i32) -> (i32, i32) {
    %c0_i32 = arith.constant 0 : i32
    %c0_i32_0 = arith.constant 0 : i32
    %c0_i32_1 = arith.constant 0 : i32
    return %c0_i32, %c0_i32_0 : i32, i32
  }
  func.func @transform_4(%arg0: i32) -> (i32, i32) {
    %c0_i32 = arith.constant 0 : i32
    %c0_i32_0 = arith.constant 0 : i32
    %c0_i32_1 = arith.constant 0 : i32
    return %c0_i32, %c0_i32_0 : i32, i32
  }
  func.func @transform_5(%arg0: i32) -> (i32, i32) {
    %c0_i32 = arith.constant 0 : i32
    %c0_i32_0 = arith.constant 0 : i32
    return %arg0, %c0_i32 : i32, i32
  }
}

</mosaic_0001>

<bundles_post_ra>
// kernel: policy_forward.1
= control target key start
LH: loop header
LB: loop body
LE: loop exit
PB: predicated region body
PF: predicated region fallthrough
CT: control target
= control target key end

     0   :  { %s1065_s18 = smov 0   ;;  %s1313_s0 = inlined_call_operand.vmem [shape: f32[256,4], index: 0, kind: input, shape index: {}]   ;;  %s1314_s1 = inlined_call_operand.vmem [shape: f32[4,128], index: 1, kind: input, shape index: {}]   ;;  %s1315_s2 = inlined_call_operand.vmem [shape: f32[1,128], index: 2, kind: input, shape index: {}]   ;;  %s1316_s3 = inlined_call_operand.vmem [shape: f32[128,128], index: 3, kind: input, shape index: {}]   ;;  %s1317_s4 = inlined_call_operand.vmem [shape: f32[1,128], index: 4, kind: input, shape index: {}]   ;;  %s1318_s5 = inlined_call_operand.vmem [shape: f32[256,128], index: 5, kind: output, shape index: {}]  }
   0x1 LB: > { %s892_s19 = sadd.s32 4294967295, %s1033_s18   ;;  %p896_p0 = scmp.ge.s32.totalorder %s1033_s18, 1  ;;  %s1033_s18 = sphi %s1065_s18, %s15_s18  }
   0x2   : > { %p188_p1 = scmp.lt.s32.totalorder %s1033_s18, 3 }
   0x4   : > { %p189_p2 = pnand %p896_p0, %p188_p1 }
   0x5   : > { %s897_s22 = sshll.u32 (!%p189_p2), %s892_s19, 4 }
   0x6   : > { %192 = sbr.rel (%p189_p2) target bundleno = 647 (0x287), region = 40  ;;  %p217_p3 = scmp.lt.s32.totalorder (!%p189_p2), %s897_s22, 31 }
   0xb   : > { %v244_v0 = vld [vmem:[%s1314_s1] sm:$0xf]  ;;  %vm298_vm0 = vcmask 1043456   ;;  %s1320_s22 = smov (!%p217_p3, %s897_s22), 31  ;;  %vm249_vm1 = vcmask 31744   ;;  %v398_v10 = vld [vmem:[%s1316_s3 + $0x78] sm:$0xff] }
   0xc   : > { %901 = vmatpush.msk.msra.mxu0 %vm298_vm0, %v244_v0  ;;  %920 = vmatpush.msk.msra.mxu3 %vm298_vm0, %v244_v0  ;;  %s898_s23 = sshll.u32 %s1320_s22, 3  ;;  %v397_v11 = vld [vmem:[%s1316_s3 + $0x70] sm:$0xff]  ;;  %v396_v12 = vld [vmem:[%s1316_s3 + $0x68] sm:$0xff]  ;;  %v395_v14 = vld [vmem:[%s1316_s3 + $0x60] sm:$0xff] }
   0xd   : > { %s1084_s26 = scalar_lea.vmem %s1313_s0, %s898_s23  ;;  %403 = vmatpush.msra.mxu1 %v398_v10  ;;  %921 = vmatpush.msra.mxu2 %v398_v10  ;;  %v394_v16 = vld [vmem:[%s1316_s3 + $0x58] sm:$0xff]  ;;  %v393_v17 = vld [vmem:[%s1316_s3 + $0x50] sm:$0xff]  ;;  %v392_v18 = vld [vmem:[%s1316_s3 + $0x48] sm:$0xff]  ;;  %s1269_s19 = scalar_lea.vmem %s1318_s5, %s898_s23 }
   0xe   : > { %v228_v1 = vld [vmem:[%s1084_s26] sm:$0xff]  ;;  %v229_v2 = vld [vmem:[%s1084_s26 + $0x8] sm:$0xff]  ;;  %v230_v3 = vld [vmem:[%s1084_s26 + $0x10] sm:$0xff]  ;;  %922 = vmatpush.msrb.mxu3 %v398_v10 }
   0xf   : > { %902 = vmatmul.msk.f32.vlgmr.msra.gmra.mxu0 %vm249_vm1, %v228_v1  ;;  %v231_v4 = vld [vmem:[%s1084_s26 + $0x18] sm:$0xff]  ;;  %v238_v5 = vld [vmem:[%s1084_s26 + $0x50] sm:$0xff]  ;;  %v232_v6 = vld [vmem:[%s1084_s26 + $0x20] sm:$0xff]  ;;  %404 = vmatpush.msra.mxu1 %v397_v11 }
  0x10   : > { %912 = vmatmul.msk.f32.vlgmr.msra.gmra.mxu3 %vm249_vm1, %v238_v5  ;;  %v239_v7 = vld [vmem:[%s1084_s26 + $0x58] sm:$0xff]  ;;  %v233_v8 = vld [vmem:[%s1084_s26 + $0x28] sm:$0xff]  ;;  %v240_v9 = vld [vmem:[%s1084_s26 + $0x60] sm:$0xff]  ;;  %923 = vmatpush.msra.mxu2 %v397_v11 }
  0x11   : > { %v234_v13 = vld [vmem:[%s1084_s26 + $0x30] sm:$0xff]  ;;  %924 = vmatpush.msrb.mxu3 %v397_v11  ;;  %v241_v15 = vld [vmem:[%s1084_s26 + $0x68] sm:$0xff]  ;;  %405 = vmatpush.msra.mxu1 %v396_v12  ;;  %v235_v19 = vld [vmem:[%s1084_s26 + $0x38] sm:$0xff] }
  0x12   : > { %925 = vmatpush.msra.mxu2 %v396_v12  ;;  %v391_v20 = vld [vmem:[%s1316_s3 + $0x40] sm:$0xff]  ;;  %v242_v21 = vld [vmem:[%s1084_s26 + $0x70] sm:$0xff]  ;;  %v390_v22 = vld [vmem:[%s1316_s3 + $0x38] sm:$0xff] }
  0x13   : > { %926 = vmatpush.msrb.mxu3 %v396_v12  ;;  %406 = vmatpush.msra.mxu1 %v395_v14  ;;  %v389_v23 = vld [vmem:[%s1316_s3 + $0x30] sm:$0xff]  ;;  %v388_v24 = vld [vmem:[%s1316_s3 + $0x28] sm:$0xff]  ;;  %v236_v25 = vld [vmem:[%s1084_s26 + $0x40] sm:$0xff] }
  0x14   : > { %927 = vmatpush.msra.mxu2 %v395_v14  ;;  %v387_v26 = vld [vmem:[%s1316_s3 + $0x20] sm:$0xff]  ;;  %v243_v27 = vld [vmem:[%s1084_s26 + $0x78] sm:$0xff]  ;;  %v237_v29 = vld [vmem:[%s1084_s26 + $0x48] sm:$0xff] }
  0x15   : > { %407 = vmatpush.msra.mxu1 %v394_v16  ;;  %928 = vmatpush.msrb.mxu3 %v395_v14  ;;  %v386_v28 = vld [vmem:[%s1316_s3 + $0x18] sm:$0xff]  ;;  %v385_v30 = vld [vmem:[%s1316_s3 + $0x10] sm:$0xff]  ;;  %v384_v31 = vld [vmem:[%s1316_s3 + $0x8] sm:$0xff] }
  0x16   : > { %929 = vmatpush.msra.mxu2 %v394_v16  ;;  %v383_v32 = vld [vmem:[%s1316_s3] sm:$0xff] }
  0x17   : > { %903 = vmatmul.msk.f32.gmra.mxu0 %vm249_vm1, %v229_v2  ;;  %408 = vmatpush.msra.mxu1 %v393_v17  ;;  %v961_v33 = vld [vmem:[%s1315_s2] ss:$0 sm:$0xff] }
  0x18   : > { %913 = vmatmul.msk.f32.gmra.mxu3 %vm249_vm1, %v239_v7  ;;  %931 = vmatpush.msra.mxu2 %v393_v17 }
  0x19   : > { %930 = vmatpush.msrb.mxu3 %v394_v16  ;;  %409 = vmatpush.msra.mxu1 %v392_v18 }
  0x1a   : > { %933 = vmatpush.msra.mxu2 %v392_v18 }
  0x1b   : > { %932 = vmatpush.msrb.mxu3 %v393_v17  ;;  %410 = vmatpush.msra.mxu1 %v391_v20 }
  0x1c   : > { %935 = vmatpush.msra.mxu2 %v391_v20 }
  0x1d   : > { %411 = vmatpush.msra.mxu1 %v390_v22  ;;  %934 = vmatpush.msrb.mxu3 %v392_v18  ;;  %v962_v18 = vld [vmem:[%s1317_s4] ss:$0 sm:$0xff] }
  0x1e   : > { %937 = vmatpush.msra.mxu2 %v390_v22 }
  0x1f   : > { %904 = vmatmul.msk.f32.gmra.mxu0 %vm249_vm1, %v230_v3  ;;  %412 = vmatpush.msra.mxu1 %v389_v23 }
  0x20   : > { %914 = vmatmul.msk.f32.gmra.mxu3 %vm249_vm1, %v240_v9  ;;  %939 = vmatpush.msra.mxu2 %v389_v23 }
  0x21   : > { %936 = vmatpush.msrb.mxu3 %v391_v20  ;;  %413 = vmatpush.msra.mxu1 %v388_v24 }
  0x22   : > { %941 = vmatpush.msra.mxu2 %v388_v24 }
  0x23   : > { %938 = vmatpush.msrb.mxu3 %v390_v22  ;;  %414 = vmatpush.msra.mxu1 %v387_v26 }
  0x24   : > { %943 = vmatpush.msra.mxu2 %v387_v26 }
  0x25   : > { %415 = vmatpush.msra.mxu1 %v386_v28  ;;  %940 = vmatpush.msrb.mxu3 %v389_v23 }
  0x26   : > { %945 = vmatpush.msra.mxu2 %v386_v28 }
  0x27   : > { %905 = vmatmul.msk.f32.gmra.mxu0 %vm249_vm1, %v231_v4  ;;  %942 = vmatpush.msrb.mxu3 %v388_v24 }
  0x28   : > { %915 = vmatmul.msk.f32.gmra.mxu3 %vm249_vm1, %v241_v15  ;;  %416 = vmatpush.msra.mxu1 %v385_v30 }
  0x29   : > { %944 = vmatpush.msrb.mxu3 %v387_v26  ;;  %947 = vmatpush.msra.mxu2 %v385_v30 }
  0x2a   : > { %417 = vmatpush.msra.mxu1 %v384_v31 }
  0x2b   : > { %946 = vmatpush.msrb.mxu3 %v386_v28  ;;  %949 = vmatpush.msra.mxu2 %v384_v31 }
  0x2c   : > { %418 = vmatpush.msra.mxu1 %v383_v32 }
  0x2d   : > { %948 = vmatpush.msrb.mxu3 %v385_v30  ;;  %951 = vmatpush.msra.mxu2 %v383_v32 }
  0x2f   : > { %906 = vmatmul.msk.f32.gmra.mxu0 %vm249_vm1, %v232_v6  ;;  %950 = vmatpush.msrb.mxu3 %v384_v31 }
  0x30   : > { %916 = vmatmul.msk.f32.gmra.mxu3 %vm249_vm1, %v242_v21 }
  0x31   : > { %952 = vmatpush.msrb.mxu3 %v383_v32 }
  0x37   : > { %907 = vmatmul.msk.f32.gmra.mxu0 %vm249_vm1, %v233_v8 }
  0x38   : > { %917 = vmatmul.msk.f32.gmra.mxu3 %vm249_vm1, %v243_v27 }
  0x3f   : > { %908 = vmatmul.msk.f32.gmra.mxu0 %vm249_vm1, %v234_v13 }
  0x47   : > { %909 = vmatmul.msk.f32.gmra.mxu0 %vm249_vm1, %v235_v19 }
  0x4f   : > { %910 = vmatmul.msk.f32.gmra.mxu0 %vm249_vm1, %v236_v25 }
  0x57   : > { %911 = vmatmul.msk.f32.gmra.mxu0 %vm249_vm1, %v237_v29 }
  0x8c   : > { %v319_v34 = vpop.f32.mrf.mxu0 }
  0x8d   : > { %v320_v35 = vadd.f32 %v961_v33, %v319_v34 }
  0x8f   : > { %v367_v36 = vmax.f32 %v320_v35, 0.0 }
  0x91   : > { %419 = vmatmul.f32.vlgmr.msra.gmra.mxu1 %v367_v36 }
  0x93   : > { %v349_v47 = vpop.f32.mrf.mxu3 }
  0x94   : > { %v322_v37 = vpop.f32.mrf.mxu0  ;;  %v350_v12 = vadd.f32 %v961_v33, %v349_v47 }
  0x95   : > { %v323_v38 = vadd.f32 %v961_v33, %v322_v37 }
  0x96   : > { %v377_v13 = vmax.f32 %v350_v12, 0.0 }
  0x97   : > { %v368_v39 = vmax.f32 %v323_v38, 0.0 }
  0x99   : > { %422 = vmatmul.f32.gmra.mxu1 %v368_v39 }
  0x9b   : > { %v352_v51 = vpop.f32.mrf.mxu3 }
  0x9c   : > { %v325_v40 = vpop.f32.mrf.mxu0  ;;  %v353_v14 = vadd.f32 %v961_v33, %v352_v51 }
  0x9d   : > { %v326_v41 = vadd.f32 %v961_v33, %v325_v40 }
  0x9e   : > { %v378_v15 = vmax.f32 %v353_v14, 0.0 }
  0x9f   : > { %v369_v42 = vmax.f32 %v326_v41, 0.0 }
  0xa1   : > { %425 = vmatmul.f32.gmra.mxu1 %v369_v42 }
  0xa3   : > { %v355_v55 = vpop.f32.mrf.mxu3 }
  0xa4   : > { %v328_v43 = vpop.f32.mrf.mxu0  ;;  %v356_v16 = vadd.f32 %v961_v33, %v355_v55 }
  0xa5   : > { %v329_v44 = vadd.f32 %v961_v33, %v328_v43 }
  0xa6   : > { %v379_v17 = vmax.f32 %v356_v16, 0.0 }
  0xa7   : > { %v370_v45 = vmax.f32 %v329_v44, 0.0 }
  0xa9   : > { %428 = vmatmul.f32.gmra.mxu1 %v370_v45 }
  0xab   : > { %v358_v59 = vpop.f32.mrf.mxu3 }
  0xac   : > { %v331_v46 = vpop.f32.mrf.mxu0  ;;  %v359_v61 = vadd.f32 %v961_v33, %v358_v59 }
  0xad   : > { %v332_v48 = vadd.f32 %v961_v33, %v331_v46 }
  0xae   : > { %v380_v63 = vmax.f32 %v359_v61, 0.0 }
  0xaf   : > { %v371_v49 = vmax.f32 %v332_v48, 0.0 }
  0xb0   : > { %458 = vmatmul.f32.vlgmr.msrb.gmra.mxu3 %v380_v63 }
  0xb1   : > { %431 = vmatmul.f32.gmra.mxu1 %v371_v49 }
  0xb3   : > { %v361_v1 = vpop.f32.mrf.mxu3 }
  0xb4   : > { %v334_v50 = vpop.f32.mrf.mxu0  ;;  %v362_v3 = vadd.f32 %v961_v33, %v361_v1 }
  0xb5   : > { %v335_v52 = vadd.f32 %v961_v33, %v334_v50 }
  0xb6   : > { %v381_v5 = vmax.f32 %v362_v3, 0.0 }
  0xb7   : > { %v372_v53 = vmax.f32 %v335_v52, 0.0 }
  0xb8   : > { %461 = vmatmul.f32.gmra.mxu3 %v381_v5 }
  0xb9   : > { %434 = vmatmul.f32.gmra.mxu1 %v372_v53 }
  0xbb   : > { %v364_v7 = vpop.f32.mrf.mxu3 }
  0xbc   : > { %v337_v54 = vpop.f32.mrf.mxu0  ;;  %v365_v9 = vadd.f32 %v961_v33, %v364_v7 }
  0xbd   : > { %v338_v56 = vadd.f32 %v961_v33, %v337_v54 }
  0xbe   : > { %v382_v11 = vmax.f32 %v365_v9, 0.0 }
  0xbf   : > { %v373_v57 = vmax.f32 %v338_v56, 0.0 }
  0xc0   : > { %464 = vmatmul.f32.gmra.mxu3 %v382_v11 }
  0xc1   : > { %437 = vmatmul.f32.vlgmr.msra.gmra.mxu2 %v373_v57 }
  0xc4   : > { %v340_v58 = vpop.f32.mrf.mxu0 }
  0xc5   : > { %v341_v60 = vadd.f32 %v961_v33, %v340_v58 }
  0xc7   : > { %v374_v62 = vmax.f32 %v341_v60, 0.0 }
  0xc9   : > { %440 = vmatmul.f32.gmra.mxu2 %v374_v62 }
  0xcc   : > { %v343_v0 = vpop.f32.mrf.mxu0 }
  0xcd   : > { %v344_v2 = vadd.f32 %v961_v33, %v343_v0 }
  0xcf   : > { %v375_v4 = vmax.f32 %v344_v2, 0.0 }
  0xd1   : > { %443 = vmatmul.f32.gmra.mxu2 %v375_v4 }
  0xd4   : > { %v346_v6 = vpop.f32.mrf.mxu0 }
  0xd5   : > { %v347_v8 = vadd.f32 %v961_v33, %v346_v6 }
  0xd7   : > { %v376_v10 = vmax.f32 %v347_v8, 0.0 }
  0xd9   : > { %446 = vmatmul.f32.gmra.mxu2 %v376_v10 }
  0xe1   : > { %449 = vmatmul.f32.gmra.mxu2 %v377_v13 }
  0xe9   : > { %452 = vmatmul.f32.gmra.mxu2 %v378_v15 }
  0xf1   : > { %455 = vmatmul.f32.gmra.mxu2 %v379_v17 }
 0x10e   : > { %v420_v19 = vpop.f32.mrf.mxu1 }
 0x10f   : > { %v421_v20 = vadd.f32 %v962_v18, %v420_v19 }
 0x111   : > { %468 = vmax.xlane.f32.xlu0 %v421_v20 }
 0x116   : > { %v423_v21 = vpop.f32.mrf.mxu1 }
 0x117   : > { %v424_v22 = vadd.f32 %v962_v18, %v423_v21 }
 0x119   : > { %470 = vmax.xlane.f32.xlu0 %v424_v22 }
 0x11e   : > { %v426_v23 = vpop.f32.mrf.mxu1 }
 0x11f   : > { %v427_v24 = vadd.f32 %v962_v18, %v426_v23 }
 0x121   : > { %472 = vmax.xlane.f32.xlu1 %v427_v24 }
 0x126   : > { %v429_v25 = vpop.f32.mrf.mxu1 }
 0x127   : > { %v430_v26 = vadd.f32 %v962_v18, %v429_v25 }
 0x129   : > { %474 = vmax.xlane.f32.xlu1 %v430_v26 }
 0x12e   : > { %v432_v27 = vpop.f32.mrf.mxu1 }
 0x12f   : > { %v433_v28 = vadd.f32 %v962_v18, %v432_v27 }
 0x131   : > { %476 = vmax.xlane.f32.xlu2 %v433_v28 }
 0x133   : > { %v459_v40 = vpop.f32.mrf.mxu3 }
 0x134   : > { %v1190_v42 = vadd.f32 %v962_v18, %v459_v40 }
 0x136   : > { %v435_v29 = vpop.f32.mrf.mxu1 }
 0x137   : > { %v1172_v30 = vadd.f32 %v962_v18, %v435_v29 }
 0x139   : > { %478 = vmax.xlane.f32.xlu2 %v1172_v30 }
 0x13b   : > { %v462_v45 = vpop.f32.mrf.mxu3 }
 0x13c   : > { %v1196_v46 = vadd.f32 %v962_v18, %v462_v45 }
 0x143   : > { %v465_v49 = vpop.f32.mrf.mxu3 }
 0x144   : > { %v438_v31 = vpop.f32.mrf.mxu2  ;;  %v1202_v50 = vadd.f32 %v962_v18, %v465_v49 }
 0x145   : > { %v1175_v32 = vadd.f32 %v962_v18, %v438_v31 }
 0x147   : > { %480 = vmax.xlane.f32.xlu0 %v1175_v32 }
 0x14c   : > { %v441_v33 = vpop.f32.mrf.mxu2 }
 0x14d   : > { %v1178_v34 = vadd.f32 %v962_v18, %v441_v33 }
 0x14f   : > { %482 = vmax.xlane.f32.xlu1 %v1178_v34 }
 0x154   : > { %v444_v35 = vpop.f32.mrf.mxu2 }
 0x155   : > { %v1181_v36 = vadd.f32 %v962_v18, %v444_v35 }
 0x157   : > { %484 = vmax.xlane.f32.xlu2 %v1181_v36 }
 0x15c   : > { %v447_v37 = vpop.f32.mrf.mxu2 }
 0x15d   : > { %v1184_v38 = vadd.f32 %v962_v18, %v447_v37 }
 0x15f   : > { %486 = vmax.xlane.f32.xlu0 %v1184_v38 }
 0x164   : > { %v450_v39 = vpop.f32.mrf.mxu2 }
 0x165   : > { %v1187_v41 = vadd.f32 %v962_v18, %v450_v39 }
 0x167   : > { %488 = vmax.xlane.f32.xlu1 %v1187_v41 }
 0x16c   : > { %v453_v43 = vpop.f32.mrf.mxu2 }
 0x16d   : > { %v1192_v44 = vadd.f32 %v962_v18, %v453_v43 }
 0x16f   : > { %490 = vmax.xlane.f32.xlu2 %v1192_v44  ;;  %494 = vmax.xlane.f32.xlu1 %v1190_v42 }
 0x174   : > { %v456_v47 = vpop.f32.mrf.mxu2 }
 0x175   : > { %v1198_v48 = vadd.f32 %v962_v18, %v456_v47 }
 0x177   : > { %496 = vmax.xlane.f32.xlu2 %v1196_v46  ;;  %492 = vmax.xlane.f32.xlu0 %v1198_v48 }
 0x17f   : > { %498 = vmax.xlane.f32.xlu0 %v1202_v50 }
 0x184   : > { %v469_v51 = vpop.xlane.xlu0 %468 }
 0x185   : > { %v500_v52 = vsub.f32 %v421_v20, %v469_v51 }
 0x187   : > { %v516_v53 = vmul.f32 1.442695, %v500_v52 }
 0x189   : > { %963 = vpow2.f32 %v516_v53 }
 0x18c   : > { %v471_v54 = vpop.xlane.xlu0 %470 }
 0x18d   : > { %v501_v55 = vsub.f32 %v424_v22, %v471_v54 }
 0x18f   : > { %v1205_v56 = vpop.eup %963  ;;  %v518_v57 = vmul.f32 1.442695, %v501_v55 }
 0x190   : > { %548 = vadd.xlane.f32.xlu1 %v1205_v56 }
 0x191   : > { %965 = vpow2.f32 %v518_v57 }
 0x194   : > { %v473_v58 = vpop.xlane.xlu1 %472 }
 0x195   : > { %v502_v59 = vsub.f32 %v427_v24, %v473_v58 }
 0x197   : > { %v1208_v60 = vpop.eup %965  ;;  %v520_v61 = vmul.f32 1.442695, %v502_v59 }
 0x198   : > { %550 = vadd.xlane.f32.xlu2 %v1208_v60 }
 0x199   : > { %967 = vpow2.f32 %v520_v61 }
 0x19c   : > { %v475_v62 = vpop.xlane.xlu1 %474 }
 0x19d   : > { %v503_v63 = vsub.f32 %v430_v26, %v475_v62 }
 0x19f   : > { %v1211_v0 = vpop.eup %967  ;;  %v522_v1 = vmul.f32 1.442695, %v503_v63 }
 0x1a0   : > { %552 = vadd.xlane.f32.xlu0 %v1211_v0 }
 0x1a1   : > { %969 = vpow2.f32 %v522_v1 }
 0x1a4   : > { %v477_v2 = vpop.xlane.xlu2 %476 }
 0x1a5   : > { %v504_v3 = vsub.f32 %v433_v28, %v477_v2 }
 0x1a7   : > { %v1214_v4 = vpop.eup %969  ;;  %v524_v5 = vmul.f32 1.442695, %v504_v3 }
 0x1a8   : > { %554 = vadd.xlane.f32.xlu1 %v1214_v4 }
 0x1a9   : > { %971 = vpow2.f32 %v524_v5 }
 0x1ac   : > { %v479_v6 = vpop.xlane.xlu2 %478 }
 0x1ad   : > { %v505_v7 = vsub.f32 %v1172_v30, %v479_v6 }
 0x1af   : > { %v1218_v8 = vpop.eup %971  ;;  %v526_v9 = vmul.f32 1.442695, %v505_v7 }
 0x1b0   : > { %556 = vadd.xlane.f32.xlu2 %v1218_v8 }
 0x1b1   : > { %973 = vpow2.f32 %v526_v9 }
 0x1b7   : > { %v1221_v10 = vpop.eup %973 }
 0x1b8   : > { %558 = vadd.xlane.f32.xlu0 %v1221_v10 }
 0x1ba   : > { %v481_v11 = vpop.xlane.xlu0 %480 }
 0x1bb   : > { %v506_v12 = vsub.f32 %v1175_v32, %v481_v11 }
 0x1bd   : > { %v528_v13 = vmul.f32 1.442695, %v506_v12 }
 0x1bf   : > { %975 = vpow2.f32 %v528_v13 }
 0x1c2   : > { %v483_v14 = vpop.xlane.xlu1 %482 }
 0x1c3   : > { %v507_v15 = vsub.f32 %v1178_v34, %v483_v14 }
 0x1c5   : > { %v1226_v16 = vpop.eup %975  ;;  %v530_v17 = vmul.f32 1.442695, %v507_v15 }
 0x1c6   : > { %560 = vadd.xlane.f32.xlu1 %v1226_v16 }
 0x1c7   : > { %977 = vpow2.f32 %v530_v17 }
 0x1ca   : > { %v485_v18 = vpop.xlane.xlu2 %484 }
 0x1cb   : > { %v508_v19 = vsub.f32 %v1181_v36, %v485_v18 }
 0x1cd   : > { %v1230_v20 = vpop.eup %977  ;;  %v532_v21 = vmul.f32 1.442695, %v508_v19 }
 0x1ce   : > { %562 = vadd.xlane.f32.xlu2 %v1230_v20 }
 0x1cf   : > { %979 = vpow2.f32 %v532_v21 }
 0x1d2   : > { %v487_v22 = vpop.xlane.xlu0 %486 }
 0x1d3   : > { %v509_v23 = vsub.f32 %v1184_v38, %v487_v22 }
 0x1d5   : > { %v1234_v24 = vpop.eup %979  ;;  %v534_v25 = vmul.f32 1.442695, %v509_v23 }
 0x1d6   : > { %564 = vadd.xlane.f32.xlu0 %v1234_v24 }
 0x1d7   : > { %981 = vpow2.f32 %v534_v25 }
 0x1da   : > { %v489_v26 = vpop.xlane.xlu1 %488 }
 0x1db   : > { %v510_v27 = vsub.f32 %v1187_v41, %v489_v26 }
 0x1dd   : > { %v1238_v28 = vpop.eup %981  ;;  %v536_v29 = vmul.f32 1.442695, %v510_v27 }
 0x1de   : > { %566 = vadd.xlane.f32.xlu1 %v1238_v28 }
 0x1df   : > { %983 = vpow2.f32 %v536_v29 }
 0x1e2   : > { %v491_v30 = vpop.xlane.xlu2 %490  ;;  %v495_v31 = vpop.xlane.xlu1 %494 }
 0x1e3   : > { %v511_v32 = vsub.f32 %v1192_v44, %v491_v30  ;;  %v513_v33 = vsub.f32 %v1190_v42, %v495_v31 }
 0x1e5   : > { %v1243_v34 = vpop.eup %983  ;;  %v538_v35 = vmul.f32 1.442695, %v511_v32  ;;  %v542_v36 = vmul.f32 1.442695, %v513_v33 }
 0x1e6   : > { %568 = vadd.xlane.f32.xlu2 %v1243_v34 }
 0x1e7   : > { %985 = vpow2.f32 %v538_v35 }
 0x1e8   : > { %987 = vpow2.f32 %v542_v36 }
 0x1ea   : > { %v497_v37 = vpop.xlane.xlu2 %496  ;;  %v493_v38 = vpop.xlane.xlu0 %492 }
 0x1eb   : > { %v514_v39 = vsub.f32 %v1196_v46, %v497_v37  ;;  %v512_v40 = vsub.f32 %v1198_v48, %v493_v38 }
 0x1ed   : > { %v1248_v41 = vpop.eup %985  ;;  %v544_v43 = vmul.f32 1.442695, %v514_v39  ;;  %v540_v44 = vmul.f32 1.442695, %v512_v40 }
 0x1ee   : > { %v1250_v45 = vpop.eup %987  ;;  %570 = vadd.xlane.f32.xlu0 %v1248_v41 }
 0x1ef   : > { %989 = vpow2.f32 %v544_v43  ;;  %574 = vadd.xlane.f32.xlu2 %v1250_v45 }
 0x1f0   : > { %991 = vpow2.f32 %v540_v44 }
 0x1f2   : > { %v499_v42 = vpop.xlane.xlu0 %498 }
 0x1f3   : > { %v515_v47 = vsub.f32 %v1202_v50, %v499_v42 }
 0x1f5   : > { %v1255_v49 = vpop.eup %989  ;;  %v546_v46 = vmul.f32 1.442695, %v515_v47 }
 0x1f6   : > { %v1257_v51 = vpop.eup %991  ;;  %576 = vadd.xlane.f32.xlu0 %v1255_v49 }
 0x1f7   : > { %993 = vpow2.f32 %v546_v46  ;;  %572 = vadd.xlane.f32.xlu1 %v1257_v51 }
 0x1fd   : > { %v1261_v48 = vpop.eup %993 }
 0x1ff   : > { %578 = vadd.xlane.f32.xlu1 %v1261_v48 }
 0x203   : > { %v549_v52 = vpop.xlane.xlu1 %548 }
 0x204   : > { %995 = vrcp.f32 %v549_v52  ;;  %v591_v57 = vand.u32 2147483648, %v549_v52  ;;  %v589_v59 = vand.u32 2147483647, %v549_v52  ;;  %vm585_vm3 = vweird.f32 %v549_v52 }
 0x206   : > { %v592_v63 = vor.u32 1.1754944e-38, %v591_v57  ;;  %vm590_vm5 = vcmp.eq.f32.partialorder %v589_v59, 8.507059e+37 }
 0x20a   : > { %v996_v53 = vpop.eup %995 }
 0x20b   : > { %v581_v54 = vmul.f32 %v996_v53, %v549_v52  ;;  %v551_v55 = vpop.xlane.xlu2 %550  ;;  %vm586_vm2 = vweird.f32 %v996_v53 }
 0x20c   : > { %997 = vrcp.f32 %v551_v55  ;;  %vm587_vm4 = vmor %vm585_vm3, %vm586_vm2  ;;  %v606_v9 = vand.u32 2147483648, %v551_v55  ;;  %v604_v12 = vand.u32 2147483647, %v551_v55  ;;  %vm600_vm7 = vweird.f32 %v551_v55 }
 0x20d   : > { %v582_v50 = vsub.f32 1.0, %v581_v54 }
 0x20e   : > { %v607_v15 = vor.u32 1.1754944e-38, %v606_v9  ;;  %vm605_vm9 = vcmp.eq.f32.partialorder %v604_v12, 8.507059e+37 }
 0x20f   : > { %v583_v58 = vmul.f32 %v996_v53, %v582_v50 }
 0x211   : > { %v584_v61 = vadd.f32 %v996_v53, %v583_v58 }
 0x212   : > { %v998_v62 = vpop.eup %997 }
 0x213   : > { %v588_v1 = vsel %vm587_vm4, %v996_v53, %v584_v61  ;;  %v596_v2 = vmul.f32 %v998_v62, %v551_v55  ;;  %v553_v3 = vpop.xlane.xlu0 %552  ;;  %vm601_vm6 = vweird.f32 %v998_v62 }
 0x214   : > { %v593_v5 = vsel %vm590_vm5, %v592_v63, %v588_v1  ;;  %999 = vrcp.f32 %v553_v3  ;;  %vm602_vm8 = vmor %vm600_vm7, %vm601_vm6  ;;  %v621_v23 = vand.u32 2147483648, %v553_v3  ;;  %v619_v26 = vand.u32 2147483647, %v553_v3 }
 0x215   : > { %v594_v6 = vmul.f32 %v1205_v56, %v593_v5  ;;  %v597_v7 = vsub.f32 1.0, %v596_v2  ;;  %vm615_vm11 = vweird.f32 %v553_v3 }
 0x216   : > { %v622_v30 = vor.u32 1.1754944e-38, %v621_v23  ;;  %vm620_vm13 = vcmp.eq.f32.partialorder %v619_v26, 8.507059e+37 }
 0x217   : > { %820 = vst [vmem:[%s1269_s19] sm:$0xff] %v594_v6  ;;  %v598_v11 = vmul.f32 %v998_v62, %v597_v7 }
 0x219   : > { %v599_v13 = vadd.f32 %v998_v62, %v598_v11 }
 0x21a   : > { %v1000_v14 = vpop.eup %999 }
 0x21b   : > { %v603_v17 = vsel %vm602_vm8, %v998_v62, %v599_v13  ;;  %v611_v18 = vmul.f32 %v1000_v14, %v553_v3  ;;  %v555_v19 = vpop.xlane.xlu1 %554  ;;  %vm616_vm10 = vweird.f32 %v1000_v14 }
 0x21c   : > { %v608_v21 = vsel %vm605_vm9, %v607_v15, %v603_v17  ;;  %1001 = vrcp.f32 %v555_v19  ;;  %vm617_vm12 = vmor %vm615_vm11, %vm616_vm10  ;;  %v636_v37 = vand.u32 2147483648, %v555_v19  ;;  %v634_v39 = vand.u32 2147483647, %v555_v19 }
 0x21d   : > { %v609_v56 = vmul.f32 %v1208_v60, %v608_v21  ;;  %v612_v22 = vsub.f32 1.0, %v611_v18  ;;  %vm630_vm15 = vweird.f32 %v555_v19 }
 0x21e   : > { %v637_v44 = vor.u32 1.1754944e-38, %v636_v37  ;;  %vm635_vm1 = vcmp.eq.f32.partialorder %v634_v39, 8.507059e+37 }
 0x21f   : > { %821 = vst [vmem:[%s1269_s19 + $0x8] sm:$0xff] %v609_v56  ;;  %v613_v25 = vmul.f32 %v1000_v14, %v612_v22 }
 0x221   : > { %v614_v27 = vadd.f32 %v1000_v14, %v613_v25 }
 0x222   : > { %v1002_v29 = vpop.eup %1001 }
 0x223   : > { %v618_v31 = vsel %vm617_vm12, %v1000_v14, %v614_v27  ;;  %v626_v32 = vmul.f32 %v1002_v29, %v555_v19  ;;  %v557_v33 = vpop.xlane.xlu2 %556  ;;  %vm631_vm14 = vweird.f32 %v1002_v29 }
 0x224   : > { %v623_v35 = vsel %vm620_vm13, %v622_v30, %v618_v31  ;;  %1003 = vrcp.f32 %v557_v33  ;;  %vm632_vm0 = vmor %vm630_vm15, %vm631_vm14  ;;  %v651_v54 = vand.u32 2147483648, %v557_v33  ;;  %v649_v50 = vand.u32 2147483647, %v557_v33 }
 0x225   : > { %v624_v60 = vmul.f32 %v1211_v0, %v623_v35  ;;  %v627_v36 = vsub.f32 1.0, %v626_v32  ;;  %vm645_vm3 = vweird.f32 %v557_v33 }
 0x226   : > { %v652_v59 = vor.u32 1.1754944e-38, %v651_v54  ;;  %vm650_vm5 = vcmp.eq.f32.partialorder %v649_v50, 8.507059e+37 }
 0x227   : > { %822 = vst [vmem:[%s1269_s19 + $0x10] sm:$0xff] %v624_v60  ;;  %v628_v38 = vmul.f32 %v1002_v29, %v627_v36 }
 0x229   : > { %v629_v40 = vadd.f32 %v1002_v29, %v628_v38 }
 0x22a   : > { %v1004_v43 = vpop.eup %1003 }
 0x22b   : > { %v633_v42 = vsel %vm632_vm0, %v1002_v29, %v629_v40  ;;  %v641_v47 = vmul.f32 %v1004_v43, %v557_v33  ;;  %v559_v46 = vpop.xlane.xlu0 %558  ;;  %vm646_vm2 = vweird.f32 %v1004_v43 }
 0x22c   : > { %v638_v52 = vsel %vm635_vm1, %v637_v44, %v633_v42  ;;  %1005 = vrcp.f32 %v559_v46  ;;  %vm647_vm4 = vmor %vm645_vm3, %vm646_vm2  ;;  %v664_v5 = vand.u32 2147483647, %v559_v46  ;;  %vm660_vm7 = vweird.f32 %v559_v46 }
 0x22d   : > { %v639_v0 = vmul.f32 %v1214_v4, %v638_v52  ;;  %v642_v53 = vsub.f32 1.0, %v641_v47  ;;  %v666_v4 = vand.u32 2147483648, %v559_v46 }
 0x22e   : > { %vm665_vm9 = vcmp.eq.f32.partialorder %v664_v5, 8.507059e+37 }
 0x22f   : > { %823 = vst [vmem:[%s1269_s19 + $0x18] sm:$0xff] %v639_v0  ;;  %v643_v55 = vmul.f32 %v1004_v43, %v642_v53  ;;  %v667_v9 = vor.u32 1.1754944e-38, %v666_v4 }
 0x231   : > { %v644_v57 = vadd.f32 %v1004_v43, %v643_v55 }
 0x232   : > { %v1006_v58 = vpop.eup %1005 }
 0x233   : > { %v648_v61 = vsel %vm647_vm4, %v1004_v43, %v644_v57  ;;  %v656_v62 = vmul.f32 %v1006_v58, %v559_v46  ;;  %vm661_vm6 = vweird.f32 %v1006_v58 }
 0x234   : > { %v653_v63 = vsel %vm650_vm5, %v652_v59, %v648_v61  ;;  %vm662_vm8 = vmor %vm660_vm7, %vm661_vm6 }
 0x235   : > { %v654_v1 = vmul.f32 %v1218_v8, %v653_v63  ;;  %v657_v2 = vsub.f32 1.0, %v656_v62 }
 0x237   : > { %824 = vst [vmem:[%s1269_s19 + $0x20] sm:$0xff] %v654_v1  ;;  %v658_v3 = vmul.f32 %v1006_v58, %v657_v2 }
 0x239   : > { %v659_v6 = vadd.f32 %v1006_v58, %v658_v3  ;;  %v561_v7 = vpop.xlane.xlu1 %560 }
 0x23a   : > { %1007 = vrcp.f32 %v561_v7  ;;  %v681_v18 = vand.u32 2147483648, %v561_v7  ;;  %v679_v21 = vand.u32 2147483647, %v561_v7  ;;  %vm675_vm11 = vweird.f32 %v561_v7 }
 0x23b   : > { %v663_v11 = vsel %vm662_vm8, %v1006_v58, %v659_v6 }
 0x23c   : > { %v668_v12 = vsel %vm665_vm9, %v667_v9, %v663_v11  ;;  %v682_v23 = vor.u32 1.1754944e-38, %v681_v18  ;;  %vm680_vm13 = vcmp.eq.f32.partialorder %v679_v21, 8.507059e+37 }
 0x23d   : > { %v669_v13 = vmul.f32 %v1221_v10, %v668_v12 }
 0x23f   : > { %825 = vst [vmem:[%s1269_s19 + $0x28] sm:$0xff] %v669_v13 }
 0x240   : > { %v1008_v8 = vpop.eup %1007 }
 0x241   : > { %v671_v14 = vmul.f32 %v1008_v8, %v561_v7  ;;  %v563_v15 = vpop.xlane.xlu2 %562  ;;  %vm676_vm10 = vweird.f32 %v1008_v8 }
 0x242   : > { %1009 = vrcp.f32 %v563_v15  ;;  %vm677_vm12 = vmor %vm675_vm11, %vm676_vm10  ;;  %v696_v31 = vand.u32 2147483648, %v563_v15  ;;  %v694_v33 = vand.u32 2147483647, %v563_v15  ;;  %vm690_vm15 = vweird.f32 %v563_v15 }
 0x243   : > { %v672_v17 = vsub.f32 1.0, %v671_v14 }
 0x244   : > { %v697_v36 = vor.u32 1.1754944e-38, %v696_v31  ;;  %vm695_vm1 = vcmp.eq.f32.partialorder %v694_v33, 8.507059e+37 }
 0x245   : > { %v673_v19 = vmul.f32 %v1008_v8, %v672_v17 }
 0x247   : > { %v674_v56 = vadd.f32 %v1008_v8, %v673_v19 }
 0x248   : > { %v1010_v22 = vpop.eup %1009 }
 0x249   : > { %v678_v25 = vsel %vm677_vm12, %v1008_v8, %v674_v56  ;;  %v686_v26 = vmul.f32 %v1010_v22, %v563_v15  ;;  %v565_v10 = vpop.xlane.xlu0 %564  ;;  %vm691_vm14 = vweird.f32 %v1010_v22 }
 0x24a   : > { %v683_v27 = vsel %vm680_vm13, %v682_v23, %v678_v25  ;;  %1011 = vrcp.f32 %v565_v10  ;;  %vm692_vm0 = vmor %vm690_vm15, %vm691_vm14  ;;  %v711_v44 = vand.u32 2147483648, %v565_v10  ;;  %v709_v47 = vand.u32 2147483647, %v565_v10 }
 0x24b   : > { %v684_v29 = vmul.f32 %v1226_v16, %v683_v27  ;;  %v687_v30 = vsub.f32 1.0, %v686_v26  ;;  %vm705_vm3 = vweird.f32 %v565_v10 }
 0x24c   : > { %v712_v0 = vor.u32 1.1754944e-38, %v711_v44  ;;  %vm710_vm5 = vcmp.eq.f32.partialorder %v709_v47, 8.507059e+37 }
 0x24d   : > { %826 = vst [vmem:[%s1269_s19 + $0x30] sm:$0xff] %v684_v29  ;;  %v688_v32 = vmul.f32 %v1010_v22, %v687_v30 }
 0x24f   : > { %v689_v35 = vadd.f32 %v1010_v22, %v688_v32 }
 0x250   : > { %v1012_v60 = vpop.eup %1011 }
 0x251   : > { %v693_v37 = vsel %vm692_vm0, %v1010_v22, %v689_v35  ;;  %v701_v38 = vmul.f32 %v1012_v60, %v565_v10  ;;  %v567_v39 = vpop.xlane.xlu1 %566  ;;  %vm706_vm2 = vweird.f32 %v1012_v60 }
 0x252   : > { %v698_v40 = vsel %vm695_vm1, %v697_v36, %v693_v37  ;;  %1013 = vrcp.f32 %v567_v39  ;;  %vm707_vm4 = vmor %vm705_vm3, %vm706_vm2  ;;  %v726_v58 = vand.u32 2147483648, %v567_v39  ;;  %v724_v61 = vand.u32 2147483647, %v567_v39 }
 0x253   : > { %v699_v16 = vmul.f32 %v1230_v20, %v698_v40  ;;  %v702_v43 = vsub.f32 1.0, %v701_v38  ;;  %vm720_vm7 = vweird.f32 %v567_v39 }
 0x254   : > { %v727_v1 = vor.u32 1.1754944e-38, %v726_v58  ;;  %vm725_vm9 = vcmp.eq.f32.partialorder %v724_v61, 8.507059e+37 }
 0x255   : > { %827 = vst [vmem:[%s1269_s19 + $0x38] sm:$0xff] %v699_v16  ;;  %v703_v42 = vmul.f32 %v1012_v60, %v702_v43 }
 0x257   : > { %v704_v46 = vadd.f32 %v1012_v60, %v703_v42 }
 0x258   : > { %v1014_v52 = vpop.eup %1013 }
 0x259   : > { %v708_v53 = vsel %vm707_vm4, %v1012_v60, %v704_v46  ;;  %v716_v54 = vmul.f32 %v1014_v52, %v567_v39  ;;  %v569_v55 = vpop.xlane.xlu2 %568  ;;  %vm721_vm6 = vweird.f32 %v1014_v52 }
 0x25a   : > { %v713_v50 = vsel %vm710_vm5, %v712_v0, %v708_v53  ;;  %1015 = vrcp.f32 %v569_v55  ;;  %vm722_vm8 = vmor %vm720_vm7, %vm721_vm6  ;;  %v741_v9 = vand.u32 2147483648, %v569_v55  ;;  %v739_v12 = vand.u32 2147483647, %v569_v55 }
 0x25b   : > { %v714_v20 = vmul.f32 %v1234_v24, %v713_v50  ;;  %v717_v57 = vsub.f32 1.0, %v716_v54  ;;  %vm735_vm11 = vweird.f32 %v569_v55 }
 0x25c   : > { %v742_v14 = vor.u32 1.1754944e-38, %v741_v9  ;;  %vm740_vm13 = vcmp.eq.f32.partialorder %v739_v12, 8.507059e+37 }
 0x25d   : > { %828 = vst [vmem:[%s1269_s19 + $0x40] sm:$0xff] %v714_v20  ;;  %v718_v59 = vmul.f32 %v1014_v52, %v717_v57 }
 0x25f   : > { %v719_v62 = vadd.f32 %v1014_v52, %v718_v59 }
 0x260   : > { %v1016_v63 = vpop.eup %1015 }
 0x261   : > { %v723_v2 = vsel %vm722_vm8, %v1014_v52, %v719_v62  ;;  %v731_v4 = vmul.f32 %v1016_v63, %v569_v55  ;;  %v571_v3 = vpop.xlane.xlu0 %570  ;;  %vm736_vm10 = vweird.f32 %v1016_v63 }
 0x262   : > { %v728_v5 = vsel %vm725_vm9, %v727_v1, %v723_v2  ;;  %v575_v6 = vpop.xlane.xlu2 %574  ;;  %1017 = vrcp.f32 %v571_v3  ;;  %vm737_vm12 = vmor %vm735_vm11, %vm736_vm10  ;;  %v756_v26 = vand.u32 2147483648, %v571_v3  ;;  %v754_v29 = vand.u32 2147483647, %v571_v3 }
 0x263   : > { %v729_v24 = vmul.f32 %v1238_v28, %v728_v5  ;;  %v732_v7 = vsub.f32 1.0, %v731_v4  ;;  %1019 = vrcp.f32 %v575_v6  ;;  %v786_v10 = vand.u32 2147483648, %v575_v6 }
 0x264   : > { %v784_v31 = vand.u32 2147483647, %v575_v6  ;;  %vm750_vm0 = vweird.f32 %v571_v3  ;;  %vm780_vm1 = vweird.f32 %v575_v6  ;;  %v757_v60 = vor.u32 1.1754944e-38, %v756_v26 }
 0x265   : > { %829 = vst [vmem:[%s1269_s19 + $0x48] sm:$0xff] %v729_v24  ;;  %v733_v11 = vmul.f32 %v1016_v63, %v732_v7  ;;  %v787_v36 = vor.u32 1.1754944e-38, %v786_v10  ;;  %vm755_vm4 = vcmp.eq.f32.partialorder %v754_v29, 8.507059e+37 }
 0x266   : > { %vm785_vm5 = vcmp.eq.f32.partialorder %v784_v31, 8.507059e+37 }
 0x267   : > { %v734_v13 = vadd.f32 %v1016_v63, %v733_v11 }
 0x268   : > { %v1018_v8 = vpop.eup %1017 }
 0x269   : > { %v1020_v15 = vpop.eup %1019  ;;  %v738_v17 = vsel %vm737_vm12, %v1016_v63, %v734_v13  ;;  %v746_v18 = vmul.f32 %v1018_v8, %v571_v3  ;;  %v1291_v19 = vpop.xlane.xlu0 %576  ;;  %vm751_vm14 = vweird.f32 %v1018_v8 }
 0x26a   : > { %v743_v28 = vsel %vm740_vm13, %v742_v14, %v738_v17  ;;  %v776_v21 = vmul.f32 %v1020_v15, %v575_v6  ;;  %v573_v56 = vpop.xlane.xlu1 %572  ;;  %1021 = vrcp.f32 %v1291_v19  ;;  %vm781_vm15 = vweird.f32 %v1020_v15  ;;  %vm752_vm2 = vmor %vm750_vm0, %vm751_vm14 }
 0x26b   : > { %v744_v22 = vmul.f32 %v1243_v34, %v743_v28  ;;  %v747_v23 = vsub.f32 1.0, %v746_v18  ;;  %1023 = vrcp.f32 %v573_v56  ;;  %vm782_vm3 = vmor %vm780_vm1, %vm781_vm15  ;;  %v801_v0 = vand.u32 2147483648, %v1291_v19 }
 0x26c   : > { %v777_v25 = vsub.f32 1.0, %v776_v21  ;;  %v771_v53 = vand.u32 2147483648, %v573_v56  ;;  %v799_v55 = vand.u32 2147483647, %v1291_v19  ;;  %v769_v20 = vand.u32 2147483647, %v573_v56 }
 0x26d   : > { %830 = vst [vmem:[%s1269_s19 + $0x50] sm:$0xff] %v744_v22  ;;  %v748_v27 = vmul.f32 %v1018_v8, %v747_v23  ;;  %vm795_vm8 = vweird.f32 %v1291_v19  ;;  %vm765_vm9 = vweird.f32 %v573_v56 }
 0x26e   : > { %v778_v30 = vmul.f32 %v1020_v15, %v777_v25  ;;  %v772_v59 = vor.u32 1.1754944e-38, %v771_v53  ;;  %vm800_vm12 = vcmp.eq.f32.partialorder %v799_v55, 8.507059e+37  ;;  %vm770_vm13 = vcmp.eq.f32.partialorder %v769_v20, 8.507059e+37 }
 0x26f   : > { %v749_v32 = vadd.f32 %v1018_v8, %v748_v27 }
 0x270   : > { %v1022_v33 = vpop.eup %1021  ;;  %v779_v35 = vadd.f32 %v1020_v15, %v778_v30 }
 0x271   : > { %v1024_v34 = vpop.eup %1023  ;;  %v753_v37 = vsel %vm752_vm2, %v1018_v8, %v749_v32  ;;  %v791_v38 = vmul.f32 %v1022_v33, %v1291_v19  ;;  %vm796_vm6 = vweird.f32 %v1022_v33 }
 0x272   : > { %v783_v39 = vsel %vm782_vm3, %v1020_v15, %v779_v35  ;;  %v758_v40 = vsel %vm755_vm4, %v757_v60, %v753_v37  ;;  %v761_v16 = vmul.f32 %v1024_v34, %v573_v56  ;;  %v579_v43 = vpop.xlane.xlu1 %578  ;;  %vm766_vm7 = vweird.f32 %v1024_v34  ;;  %vm797_vm10 = vmor %vm795_vm8, %vm796_vm6 }
 0x273   : > { %v788_v44 = vsel %vm785_vm5, %v787_v36, %v783_v39  ;;  %v759_v42 = vmul.f32 %v1248_v41, %v758_v40  ;;  %v792_v47 = vsub.f32 1.0, %v791_v38  ;;  %1025 = vrcp.f32 %v579_v43  ;;  %vm767_vm11 = vmor %vm765_vm9, %vm766_vm7 }
 0x274   : > { %v789_v46 = vmul.f32 %v1250_v45, %v788_v44  ;;  %v762_v52 = vsub.f32 1.0, %v761_v16  ;;  %v802_v45 = vor.u32 1.1754944e-38, %v801_v0  ;;  %v816_v6 = vand.u32 2147483648, %v579_v43 }
 0x275   : > { %831 = vst [vmem:[%s1269_s19 + $0x58] sm:$0xff] %v759_v42  ;;  %v793_v54 = vmul.f32 %v1022_v33, %v792_v47  ;;  %v814_v7 = vand.u32 2147483647, %v579_v43  ;;  %vm810_vm15 = vweird.f32 %v579_v43 }
 0x276   : > { %833 = vst [vmem:[%s1269_s19 + $0x68] sm:$0xff] %v789_v46  ;;  %v763_v50 = vmul.f32 %v1024_v34, %v762_v52  ;;  %v817_v11 = vor.u32 1.1754944e-38, %v816_v6 }
 0x277   : > { %v794_v57 = vadd.f32 %v1022_v33, %v793_v54  ;;  %vm815_vm1 = vcmp.eq.f32.partialorder %v814_v7, 8.507059e+37 }
 0x278   : > { %v764_v41 = vadd.f32 %v1024_v34, %v763_v50 }
 0x279   : > { %v1026_v58 = vpop.eup %1025  ;;  %v798_v61 = vsel %vm797_vm10, %v1022_v33, %v794_v57 }
 0x27a   : > { %v768_v62 = vsel %vm767_vm11, %v1024_v34, %v764_v41  ;;  %v803_v63 = vsel %vm800_vm12, %v802_v45, %v798_v61  ;;  %v806_v1 = vmul.f32 %v1026_v58, %v579_v43  ;;  %vm811_vm14 = vweird.f32 %v1026_v58 }
 0x27b   : > { %v773_v2 = vsel %vm770_vm13, %v772_v59, %v768_v62  ;;  %v804_v4 = vmul.f32 %v1255_v49, %v803_v63  ;;  %vm812_vm0 = vmor %vm810_vm15, %vm811_vm14 }
 0x27c   : > { %v774_v3 = vmul.f32 %v1257_v51, %v773_v2  ;;  %v807_v5 = vsub.f32 1.0, %v806_v1 }
 0x27d   : > { %834 = vst [vmem:[%s1269_s19 + $0x70] sm:$0xff] %v804_v4 }
 0x27e   : > { %832 = vst [vmem:[%s1269_s19 + $0x60] sm:$0xff] %v774_v3  ;;  %v808_v24 = vmul.f32 %v1026_v58, %v807_v5 }
 0x280   : > { %v809_v9 = vadd.f32 %v1026_v58, %v808_v24 }
 0x282   : > { %v813_v12 = vsel %vm812_vm0, %v1026_v58, %v809_v9 }
 0x283   : > { %v818_v13 = vsel %vm815_vm1, %v817_v11, %v813_v12 }
 0x284   : > { %v819_v8 = vmul.f32 %v1261_v48, %v818_v13 }
 0x286   : > { %835 = vst [vmem:[%s1269_s19 + $0x78] sm:$0xff] %v819_v8 }
 0x287 PF: > { %s15_s18 = sadd.s32 1, %s1033_s18  }
 0x288   : > { %p12_p4 = scmp.ge.s32.totalorder %s15_s18, 4  }
 0x28a   :  { %14 = sbr.rel (!%p12_p4) target bundleno = 1 (0x1), region = 70 }

</bundles_post_ra>
